<compile_context>
chip_gen: v6e
topology: v6e:2x2x1
jax: 0.10.0
libtpu: 0.0.40
codegen_flags: <defaults>
</compile_context>

<pallas_src>
import jax
import jax.numpy as jnp
from jax.experimental import pallas as pl
from jax.experimental.pallas import tpu as pltpu

EPS = 1e-5  # nn.LayerNorm default eps


def _dnm_kernel(x_ref, w_ref, q_ref, s_ref, o_ref):
    # x_ref : (C, TP)        channels on sublanes, pixel tile on lanes
    # w_ref : (M*O, C)       DNM_W arranged as row index m*O + o
    # q_ref : (M*O, C)       DNM_q arranged the same way
    # s_ref : (3*C + 3,)     SMEM: [g1(C), b1(C), g2(C), sum_g2, sum_b2, qs]
    # o_ref : (O, TP)
    C, TP = x_ref.shape
    MO = w_ref.shape[0]
    O = o_ref.shape[0]
    M = MO // O

    x = x_ref[...].astype(jnp.float32)                       # (C, TP)

    # --- norm1 statistics over channels (affine folded into W'/q' below) ---
    mu1 = jnp.mean(x, axis=0, keepdims=True)                  # (1, TP)
    var1 = jnp.mean((x - mu1) ** 2, axis=0, keepdims=True)    # (1, TP)
    xhat = (x - mu1) * jax.lax.rsqrt(var1 + EPS)              # (C, TP)

    w = w_ref[...].astype(jnp.float32)                        # (MO, C)
    q = q_ref[...].astype(jnp.float32)                        # (MO, C)

    # --- single pass over the C reduction axis ------------------------------
    # t = relu(norm1(x)[c] * W[:, c] - q[:, c]) is formed one channel at a
    # time; only (MO, TP)-sized values are ever live (no (O,M,C,TP) slab).
    s1 = jnp.zeros((MO, TP), jnp.float32)   # sum_c t
    s2 = jnp.zeros((MO, TP), jnp.float32)   # sum_c t*t
    sg = jnp.zeros((MO, TP), jnp.float32)   # sum_c t*g2[c]
    for c in range(C):                       # C is small -> static unroll
        g1c = s_ref[c]
        b1c = s_ref[C + c]
        g2c = s_ref[2 * C + c]
        wc = w[:, c:c + 1]                   # (MO, 1) -> lane broadcast
        qc = q[:, c:c + 1]
        w_eff = wc * g1c                     # fold norm1 affine into W / q
        q_eff = qc - wc * b1c
        t = jnp.maximum(xhat[c:c + 1, :] * w_eff - q_eff, 0.0)   # (MO, TP)
        s1 = s1 + t
        s2 = s2 + t * t
        sg = sg + t * g2c

    sum_g2 = s_ref[3 * C]
    sum_b2 = s_ref[3 * C + 1]
    qs = s_ref[3 * C + 2]

    # --- fused norm2 + sum over C (algebraic single-pass form) ---------------
    inv_c = 1.0 / C
    mu2 = s1 * inv_c
    var2 = jnp.maximum(s2 * inv_c - mu2 * mu2, 0.0)
    rstd2 = jax.lax.rsqrt(var2 + EPS)
    z = rstd2 * (sg - mu2 * sum_g2) + sum_b2                  # (MO, TP)

    # --- sum over M: rows are ordered m*O + o, each m-slice is an aligned
    #     (O, TP) block, so this is a handful of plain vector adds. ----------
    acc = z[0:O, :]
    for m in range(1, M):
        acc = acc + z[m * O:(m + 1) * O, :]

    # --- soma: relu(x - qs) ---------------------------------------------------
    o_ref[...] = jnp.maximum(acc - qs, 0.0).astype(o_ref.dtype)


def dnm_conv_forward(x_nchw, DNM_W, DNM_q, g1, b1, g2, b2, qs, *, tile_pixels=512):
    """Pallas implementation of DNM_Conv.forward (activation = relu)."""
    B, C, H, W = x_nchw.shape
    O, M, C2 = DNM_W.shape
    assert C == C2, "input_size mismatch"
    HW = H * W

    # Lane-dense pixel tile along H*W (multiple of 128, or the full axis).
    if HW <= tile_pixels:
        THW = HW
    else:
        THW = tile_pixels
        assert THW % 128 == 0 and HW % THW == 0, (
            "tile_pixels must be a multiple of 128 dividing H*W")

    # Free reshapes only — no HBM transposes, no wrapper-side dtype upcast.
    x3 = x_nchw.reshape(B, C, HW)

    # (O, M, C) -> (M*O, C) with row index m*O + o (tiny, done once per call).
    w_mo = jnp.transpose(DNM_W, (1, 0, 2)).reshape(M * O, C).astype(jnp.float32)
    q_mo = jnp.transpose(DNM_q, (1, 0, 2)).reshape(M * O, C).astype(jnp.float32)

    # Small per-channel params packed into one SMEM vector (one tiny DMA).
    scal = jnp.concatenate([
        g1.reshape(C).astype(jnp.float32),
        b1.reshape(C).astype(jnp.float32),
        g2.reshape(C).astype(jnp.float32),
        jnp.sum(g2).reshape(1).astype(jnp.float32),
        jnp.sum(b2).reshape(1).astype(jnp.float32),
        qs.reshape(1).astype(jnp.float32),
    ])

    out3 = pl.pallas_call(
        _dnm_kernel,
        out_shape=jax.ShapeDtypeStruct((B, O, HW), jnp.float32),
        grid_spec=pltpu.PrefetchScalarGridSpec(
            num_scalar_prefetch=0,
            grid=(B, HW // THW),
            in_specs=[
                pl.BlockSpec((pl.Squeezed(), C, THW), lambda b, p: (b, 0, p)),  # x
                pl.BlockSpec((M * O, C), lambda b, p: (0, 0)),                  # DNM_W
                pl.BlockSpec((M * O, C), lambda b, p: (0, 0)),                  # DNM_q
                pl.BlockSpec(memory_space=pltpu.MemorySpace.SMEM),              # scalars
            ],
            out_specs=pl.BlockSpec((pl.Squeezed(), O, THW), lambda b, p: (b, 0, p)),
        ),
        compiler_params=pltpu.CompilerParams(
            dimension_semantics=("parallel", "parallel"),
            vmem_limit_bytes=32 * 1024 * 1024,
        ),
    )(x3, w_mo, q_mo, scal)

    return out3.reshape(B, O, H, W)


def dnm_conv_reference(x_nchw, DNM_W, DNM_q, g1, b1, g2, b2, qs):
    """Pure-JAX transcription of the PyTorch forward, for verification."""
    B, C, H, W = x_nchw.shape
    O, M, _ = DNM_W.shape
    x = jnp.transpose(x_nchw, (0, 2, 3, 1))[:, :, :, None, None, :]   # (B,H,W,1,1,C)
    mu = jnp.mean(x, -1, keepdims=True)
    var = jnp.mean((x - mu) ** 2, -1, keepdims=True)
    x = (x - mu) / jnp.sqrt(var + EPS) * g1 + b1
    x = jnp.broadcast_to(x, (B, H, W, O, M, C))
    x = jax.nn.relu(x * DNM_W - DNM_q)
    mu = jnp.mean(x, -1, keepdims=True)
    var = jnp.mean((x - mu) ** 2, -1, keepdims=True)
    x = (x - mu) / jnp.sqrt(var + EPS) * g2 + b2
    x = jnp.sum(x, 5)
    x = jnp.sum(x, 4)
    x = jnp.transpose(x, (0, 3, 1, 2))
    return jax.nn.relu(x - qs[0])


if __name__ == "__main__":
    key = jax.random.PRNGKey(0)
    B, C, H, W = 2, 4, 16, 16        # input_size = C = 4
    O, M = 8, 4                      # out_size = 8, M = 4
    ks = jax.random.split(key, 6)

    x = jax.random.normal(ks[0], (B, C, H, W), jnp.float32)
    # torch.rand -> uniform [0, 1)
    DNM_W = jax.random.uniform(ks[1], (O, M, C), jnp.float32)
    DNM_q = jax.random.uniform(ks[2], (O, M, C), jnp.float32)
    qs = jax.random.uniform(ks[3], (1,), jnp.float32)
    # nn.LayerNorm defaults: weight = 1, bias = 0
    g1 = jnp.ones((C,), jnp.float32)
    b1 = jnp.zeros((C,), jnp.float32)
    g2 = jnp.ones((C,), jnp.float32)
    b2 = jnp.zeros((C,), jnp.float32)

    out = jax.block_until_ready(dnm_conv_forward(x, DNM_W, DNM_q, g1, b1, g2, b2, qs))
    ref = dnm_conv_reference(x, DNM_W, DNM_q, g1, b1, g2, b2, qs)
    assert out.shape == (B, O, H, W)
    assert jnp.allclose(out, ref, atol=1e-4, rtol=1e-4)

    # Extra sanity check with non-default norm2 affine params so the output is
    # non-trivially nonzero (default weight=1/bias=0 makes the C-sum ~0).
    g2r = jax.random.uniform(ks[4], (C,), jnp.float32) + 0.5
    b2r = jax.random.uniform(ks[5], (C,), jnp.float32)
    out2 = jax.block_until_ready(dnm_conv_forward(x, DNM_W, DNM_q, g1, b1, g2r, b2r, qs))
    ref2 = dnm_conv_reference(x, DNM_W, DNM_q, g1, b1, g2r, b2r, qs)
    assert jnp.allclose(out2, ref2, atol=1e-4, rtol=1e-4)

    print("KERNEL_OK")
</pallas_src>

<mosaic_0001>
module attributes {stable_mosaic.version = 11 : i64} {
  func.func @_dnm_kernel(%arg0: i32, %arg1: i32, %arg2: memref<1x4x256xf32, #tpu.memory_space<vmem>>, %arg3: memref<32x4xf32, #tpu.memory_space<vmem>>, %arg4: memref<32x4xf32, #tpu.memory_space<vmem>>, %arg5: memref<15xf32, #tpu.memory_space<smem>>, %arg6: memref<1x8x256xf32, #tpu.memory_space<vmem>>) attributes {dimension_semantics = [#tpu.dimension_semantics<parallel>, #tpu.dimension_semantics<parallel>], iteration_bounds = array<i64: 2, 1>, scalar_prefetch = 0 : i64, scratch_operands = 0 : i64, tpu.core_type = #tpu.core_type<tc>, window_params = [{transform_indices = @transform_0, window_bounds = array<i64: 1, 4, 256>}, {pipeline_mode = #tpu.pipeline_mode<synchronous>, transform_indices = @transform_1, window_bounds = array<i64: 32, 4>}, {pipeline_mode = #tpu.pipeline_mode<synchronous>, transform_indices = @transform_2, window_bounds = array<i64: 32, 4>}, {transform_indices = @transform_3, window_bounds = array<i64: 15>}, {transform_indices = @transform_4, window_bounds = array<i64: 1, 8, 256>}]} {
    %c0 = arith.constant 0 : index
    %c0_0 = arith.constant 0 : index
    %c0_1 = arith.constant 0 : index
    %0 = vector.load %arg2[%c0, %c0_0, %c0_1] : memref<1x4x256xf32, #tpu.memory_space<vmem>>, vector<1x4x256xf32>
    %1 = vector.shape_cast %0 : vector<1x4x256xf32> to vector<4x256xf32>
    %cst = arith.constant dense<0.000000e+00> : vector<256xf32>
    %2 = vector.multi_reduction <add>, %1, %cst [0] : vector<4x256xf32> to vector<256xf32>
    %3 = vector.shape_cast %2 : vector<256xf32> to vector<1x256xf32>
    %cst_2 = arith.constant 4.000000e+00 : f32
    %4 = vector.broadcast %cst_2 : f32 to vector<1x256xf32>
    %5 = arith.divf %3, %4 : vector<1x256xf32>
    %6 = vector.broadcast %5 : vector<1x256xf32> to vector<4x256xf32>
    %7 = arith.subf %1, %6 : vector<4x256xf32>
    %8 = arith.mulf %7, %7 : vector<4x256xf32>
    %cst_3 = arith.constant dense<0.000000e+00> : vector<256xf32>
    %9 = vector.multi_reduction <add>, %8, %cst_3 [0] : vector<4x256xf32> to vector<256xf32>
    %10 = vector.shape_cast %9 : vector<256xf32> to vector<1x256xf32>
    %cst_4 = arith.constant 4.000000e+00 : f32
    %11 = vector.broadcast %cst_4 : f32 to vector<1x256xf32>
    %12 = arith.divf %10, %11 : vector<1x256xf32>
    %13 = vector.broadcast %5 : vector<1x256xf32> to vector<4x256xf32>
    %14 = arith.subf %1, %13 : vector<4x256xf32>
    %cst_5 = arith.constant 9.99999974E-6 : f32
    %15 = vector.broadcast %cst_5 : f32 to vector<1x256xf32>
    %16 = arith.addf %12, %15 : vector<1x256xf32>
    %17 = math.rsqrt %16 : vector<1x256xf32>
    %18 = vector.broadcast %17 : vector<1x256xf32> to vector<4x256xf32>
    %19 = arith.mulf %14, %18 : vector<4x256xf32>
    %c0_6 = arith.constant 0 : index
    %c0_7 = arith.constant 0 : index
    %20 = vector.load %arg3[%c0_6, %c0_7] : memref<32x4xf32, #tpu.memory_space<vmem>>, vector<32x4xf32>
    %c0_8 = arith.constant 0 : index
    %c0_9 = arith.constant 0 : index
    %21 = vector.load %arg4[%c0_8, %c0_9] : memref<32x4xf32, #tpu.memory_space<vmem>>, vector<32x4xf32>
    %cst_10 = arith.constant 0.000000e+00 : f32
    %22 = vector.broadcast %cst_10 : f32 to vector<32x256xf32>
    %cst_11 = arith.constant 0.000000e+00 : f32
    %23 = vector.broadcast %cst_11 : f32 to vector<32x256xf32>
    %cst_12 = arith.constant 0.000000e+00 : f32
    %24 = vector.broadcast %cst_12 : f32 to vector<32x256xf32>
    %c0_13 = arith.constant 0 : index
    %25 = memref.load %arg5[%c0_13] : memref<15xf32, #tpu.memory_space<smem>>
    %c4 = arith.constant 4 : index
    %26 = memref.load %arg5[%c4] : memref<15xf32, #tpu.memory_space<smem>>
    %c8 = arith.constant 8 : index
    %27 = memref.load %arg5[%c8] : memref<15xf32, #tpu.memory_space<smem>>
    %28 = vector.extract_strided_slice %20 {offsets = [0, 0], sizes = [32, 1], strides = [1, 1]} : vector<32x4xf32> to vector<32x1xf32>
    %29 = vector.extract_strided_slice %21 {offsets = [0, 0], sizes = [32, 1], strides = [1, 1]} : vector<32x4xf32> to vector<32x1xf32>
    %30 = vector.broadcast %25 : f32 to vector<32x1xf32>
    %31 = arith.mulf %28, %30 : vector<32x1xf32>
    %32 = vector.broadcast %26 : f32 to vector<32x1xf32>
    %33 = arith.mulf %28, %32 : vector<32x1xf32>
    %34 = arith.subf %29, %33 : vector<32x1xf32>
    %35 = vector.extract_strided_slice %19 {offsets = [0, 0], sizes = [1, 256], strides = [1, 1]} : vector<4x256xf32> to vector<1x256xf32>
    %36 = vector.broadcast %35 : vector<1x256xf32> to vector<32x256xf32>
    %37 = vector.broadcast %31 : vector<32x1xf32> to vector<32x256xf32>
    %38 = arith.mulf %36, %37 : vector<32x256xf32>
    %39 = vector.broadcast %34 : vector<32x1xf32> to vector<32x256xf32>
    %40 = arith.subf %38, %39 : vector<32x256xf32>
    %cst_14 = arith.constant 0.000000e+00 : f32
    %41 = vector.broadcast %cst_14 : f32 to vector<32x256xf32>
    %42 = arith.maximumf %40, %41 : vector<32x256xf32>
    %43 = arith.addf %22, %42 : vector<32x256xf32>
    %44 = arith.mulf %42, %42 : vector<32x256xf32>
    %45 = arith.addf %23, %44 : vector<32x256xf32>
    %46 = vector.broadcast %27 : f32 to vector<32x256xf32>
    %47 = arith.mulf %42, %46 : vector<32x256xf32>
    %48 = arith.addf %24, %47 : vector<32x256xf32>
    %c1 = arith.constant 1 : index
    %49 = memref.load %arg5[%c1] : memref<15xf32, #tpu.memory_space<smem>>
    %c5 = arith.constant 5 : index
    %50 = memref.load %arg5[%c5] : memref<15xf32, #tpu.memory_space<smem>>
    %c9 = arith.constant 9 : index
    %51 = memref.load %arg5[%c9] : memref<15xf32, #tpu.memory_space<smem>>
    %52 = vector.extract_strided_slice %20 {offsets = [0, 1], sizes = [32, 1], strides = [1, 1]} : vector<32x4xf32> to vector<32x1xf32>
    %53 = vector.extract_strided_slice %21 {offsets = [0, 1], sizes = [32, 1], strides = [1, 1]} : vector<32x4xf32> to vector<32x1xf32>
    %54 = vector.broadcast %49 : f32 to vector<32x1xf32>
    %55 = arith.mulf %52, %54 : vector<32x1xf32>
    %56 = vector.broadcast %50 : f32 to vector<32x1xf32>
    %57 = arith.mulf %52, %56 : vector<32x1xf32>
    %58 = arith.subf %53, %57 : vector<32x1xf32>
    %59 = vector.extract_strided_slice %19 {offsets = [1, 0], sizes = [1, 256], strides = [1, 1]} : vector<4x256xf32> to vector<1x256xf32>
    %60 = vector.broadcast %59 : vector<1x256xf32> to vector<32x256xf32>
    %61 = vector.broadcast %55 : vector<32x1xf32> to vector<32x256xf32>
    %62 = arith.mulf %60, %61 : vector<32x256xf32>
    %63 = vector.broadcast %58 : vector<32x1xf32> to vector<32x256xf32>
    %64 = arith.subf %62, %63 : vector<32x256xf32>
    %cst_15 = arith.constant 0.000000e+00 : f32
    %65 = vector.broadcast %cst_15 : f32 to vector<32x256xf32>
    %66 = arith.maximumf %64, %65 : vector<32x256xf32>
    %67 = arith.addf %43, %66 : vector<32x256xf32>
    %68 = arith.mulf %66, %66 : vector<32x256xf32>
    %69 = arith.addf %45, %68 : vector<32x256xf32>
    %70 = vector.broadcast %51 : f32 to vector<32x256xf32>
    %71 = arith.mulf %66, %70 : vector<32x256xf32>
    %72 = arith.addf %48, %71 : vector<32x256xf32>
    %c2 = arith.constant 2 : index
    %73 = memref.load %arg5[%c2] : memref<15xf32, #tpu.memory_space<smem>>
    %c6 = arith.constant 6 : index
    %74 = memref.load %arg5[%c6] : memref<15xf32, #tpu.memory_space<smem>>
    %c10 = arith.constant 10 : index
    %75 = memref.load %arg5[%c10] : memref<15xf32, #tpu.memory_space<smem>>
    %76 = vector.extract_strided_slice %20 {offsets = [0, 2], sizes = [32, 1], strides = [1, 1]} : vector<32x4xf32> to vector<32x1xf32>
    %77 = vector.extract_strided_slice %21 {offsets = [0, 2], sizes = [32, 1], strides = [1, 1]} : vector<32x4xf32> to vector<32x1xf32>
    %78 = vector.broadcast %73 : f32 to vector<32x1xf32>
    %79 = arith.mulf %76, %78 : vector<32x1xf32>
    %80 = vector.broadcast %74 : f32 to vector<32x1xf32>
    %81 = arith.mulf %76, %80 : vector<32x1xf32>
    %82 = arith.subf %77, %81 : vector<32x1xf32>
    %83 = vector.extract_strided_slice %19 {offsets = [2, 0], sizes = [1, 256], strides = [1, 1]} : vector<4x256xf32> to vector<1x256xf32>
    %84 = vector.broadcast %83 : vector<1x256xf32> to vector<32x256xf32>
    %85 = vector.broadcast %79 : vector<32x1xf32> to vector<32x256xf32>
    %86 = arith.mulf %84, %85 : vector<32x256xf32>
    %87 = vector.broadcast %82 : vector<32x1xf32> to vector<32x256xf32>
    %88 = arith.subf %86, %87 : vector<32x256xf32>
    %cst_16 = arith.constant 0.000000e+00 : f32
    %89 = vector.broadcast %cst_16 : f32 to vector<32x256xf32>
    %90 = arith.maximumf %88, %89 : vector<32x256xf32>
    %91 = arith.addf %67, %90 : vector<32x256xf32>
    %92 = arith.mulf %90, %90 : vector<32x256xf32>
    %93 = arith.addf %69, %92 : vector<32x256xf32>
    %94 = vector.broadcast %75 : f32 to vector<32x256xf32>
    %95 = arith.mulf %90, %94 : vector<32x256xf32>
    %96 = arith.addf %72, %95 : vector<32x256xf32>
    %c3 = arith.constant 3 : index
    %97 = memref.load %arg5[%c3] : memref<15xf32, #tpu.memory_space<smem>>
    %c7 = arith.constant 7 : index
    %98 = memref.load %arg5[%c7] : memref<15xf32, #tpu.memory_space<smem>>
    %c11 = arith.constant 11 : index
    %99 = memref.load %arg5[%c11] : memref<15xf32, #tpu.memory_space<smem>>
    %100 = vector.extract_strided_slice %20 {offsets = [0, 3], sizes = [32, 1], strides = [1, 1]} : vector<32x4xf32> to vector<32x1xf32>
    %101 = vector.extract_strided_slice %21 {offsets = [0, 3], sizes = [32, 1], strides = [1, 1]} : vector<32x4xf32> to vector<32x1xf32>
    %102 = vector.broadcast %97 : f32 to vector<32x1xf32>
    %103 = arith.mulf %100, %102 : vector<32x1xf32>
    %104 = vector.broadcast %98 : f32 to vector<32x1xf32>
    %105 = arith.mulf %100, %104 : vector<32x1xf32>
    %106 = arith.subf %101, %105 : vector<32x1xf32>
    %107 = vector.extract_strided_slice %19 {offsets = [3, 0], sizes = [1, 256], strides = [1, 1]} : vector<4x256xf32> to vector<1x256xf32>
    %108 = vector.broadcast %107 : vector<1x256xf32> to vector<32x256xf32>
    %109 = vector.broadcast %103 : vector<32x1xf32> to vector<32x256xf32>
    %110 = arith.mulf %108, %109 : vector<32x256xf32>
    %111 = vector.broadcast %106 : vector<32x1xf32> to vector<32x256xf32>
    %112 = arith.subf %110, %111 : vector<32x256xf32>
    %cst_17 = arith.constant 0.000000e+00 : f32
    %113 = vector.broadcast %cst_17 : f32 to vector<32x256xf32>
    %114 = arith.maximumf %112, %113 : vector<32x256xf32>
    %115 = arith.addf %91, %114 : vector<32x256xf32>
    %116 = arith.mulf %114, %114 : vector<32x256xf32>
    %117 = arith.addf %93, %116 : vector<32x256xf32>
    %118 = vector.broadcast %99 : f32 to vector<32x256xf32>
    %119 = arith.mulf %114, %118 : vector<32x256xf32>
    %120 = arith.addf %96, %119 : vector<32x256xf32>
    %c12 = arith.constant 12 : index
    %121 = memref.load %arg5[%c12] : memref<15xf32, #tpu.memory_space<smem>>
    %c13 = arith.constant 13 : index
    %122 = memref.load %arg5[%c13] : memref<15xf32, #tpu.memory_space<smem>>
    %c14 = arith.constant 14 : index
    %123 = memref.load %arg5[%c14] : memref<15xf32, #tpu.memory_space<smem>>
    %cst_18 = arith.constant 2.500000e-01 : f32
    %124 = vector.broadcast %cst_18 : f32 to vector<32x256xf32>
    %125 = arith.mulf %115, %124 : vector<32x256xf32>
    %cst_19 = arith.constant 2.500000e-01 : f32
    %126 = vector.broadcast %cst_19 : f32 to vector<32x256xf32>
    %127 = arith.mulf %117, %126 : vector<32x256xf32>
    %128 = arith.mulf %125, %125 : vector<32x256xf32>
    %129 = arith.subf %127, %128 : vector<32x256xf32>
    %cst_20 = arith.constant 0.000000e+00 : f32
    %130 = vector.broadcast %cst_20 : f32 to vector<32x256xf32>
    %131 = arith.maximumf %129, %130 : vector<32x256xf32>
    %cst_21 = arith.constant 9.99999974E-6 : f32
    %132 = vector.broadcast %cst_21 : f32 to vector<32x256xf32>
    %133 = arith.addf %131, %132 : vector<32x256xf32>
    %134 = math.rsqrt %133 : vector<32x256xf32>
    %135 = vector.broadcast %121 : f32 to vector<32x256xf32>
    %136 = arith.mulf %125, %135 : vector<32x256xf32>
    %137 = arith.subf %120, %136 : vector<32x256xf32>
    %138 = arith.mulf %134, %137 : vector<32x256xf32>
    %139 = vector.broadcast %122 : f32 to vector<32x256xf32>
    %140 = arith.addf %138, %139 : vector<32x256xf32>
    %141 = vector.extract_strided_slice %140 {offsets = [0, 0], sizes = [8, 256], strides = [1, 1]} : vector<32x256xf32> to vector<8x256xf32>
    %142 = vector.extract_strided_slice %140 {offsets = [8, 0], sizes = [8, 256], strides = [1, 1]} : vector<32x256xf32> to vector<8x256xf32>
    %143 = arith.addf %141, %142 : vector<8x256xf32>
    %144 = vector.extract_strided_slice %140 {offsets = [16, 0], sizes = [8, 256], strides = [1, 1]} : vector<32x256xf32> to vector<8x256xf32>
    %145 = arith.addf %143, %144 : vector<8x256xf32>
    %146 = vector.extract_strided_slice %140 {offsets = [24, 0], sizes = [8, 256], strides = [1, 1]} : vector<32x256xf32> to vector<8x256xf32>
    %147 = arith.addf %145, %146 : vector<8x256xf32>
    %148 = vector.broadcast %123 : f32 to vector<8x256xf32>
    %149 = arith.subf %147, %148 : vector<8x256xf32>
    %cst_22 = arith.constant 0.000000e+00 : f32
    %150 = vector.broadcast %cst_22 : f32 to vector<8x256xf32>
    %151 = arith.maximumf %149, %150 : vector<8x256xf32>
    %c0_23 = arith.constant 0 : index
    %c0_24 = arith.constant 0 : index
    %c0_25 = arith.constant 0 : index
    %152 = vector.load %arg6[%c0_23, %c0_24, %c0_25] : memref<1x8x256xf32, #tpu.memory_space<vmem>>, vector<1x8x256xf32>
    %153 = vector.shape_cast %152 : vector<1x8x256xf32> to vector<8x256xf32>
    %154 = vector.shape_cast %151 : vector<8x256xf32> to vector<1x8x256xf32>
    tpu.vector_store %arg6[%c0_23, %c0_24, %c0_25], %154 {strides = array<i32>} : memref<1x8x256xf32, #tpu.memory_space<vmem>>, vector<1x8x256xf32>,
    return
  }
  func.func @transform_0(%arg0: i32, %arg1: i32) -> (i32, i32, i32) {
    %c0_i32 = arith.constant 0 : i32
    %c0_i32_0 = arith.constant 0 : i32
    return %arg0, %c0_i32, %arg1 : i32, i32, i32
  }
  func.func @transform_1(%arg0: i32, %arg1: i32) -> (i32, i32) {
    %c0_i32 = arith.constant 0 : i32
    %c0_i32_0 = arith.constant 0 : i32
    %c0_i32_1 = arith.constant 0 : i32
    return %c0_i32, %c0_i32_0 : i32, i32
  }
  func.func @transform_2(%arg0: i32, %arg1: i32) -> (i32, i32) {
    %c0_i32 = arith.constant 0 : i32
    %c0_i32_0 = arith.constant 0 : i32
    %c0_i32_1 = arith.constant 0 : i32
    return %c0_i32, %c0_i32_0 : i32, i32
  }
  func.func @transform_3(%arg0: i32, %arg1: i32) -> i32 {
    %c0_i32 = arith.constant 0 : i32
    %c0_i32_0 = arith.constant 0 : i32
    return %c0_i32 : i32
  }
  func.func @transform_4(%arg0: i32, %arg1: i32) -> (i32, i32, i32) {
    %c0_i32 = arith.constant 0 : i32
    %c0_i32_0 = arith.constant 0 : i32
    return %arg0, %c0_i32, %arg1 : i32, i32, i32
  }
}

</mosaic_0001>

<bundles_post_ra>
// kernel: tpu_custom_call.1
= control target key start
LH: loop header
LB: loop body
LE: loop exit
PB: predicated region body
PF: predicated region fallthrough
CT: control target
= control target key end

     0   :  { %9 = vsyncpa [#allocation4], 0  ;;  %s2024_s0 = inlined_call_operand.vmem [shape: f32[2,4,256], index: 0, kind: input, shape index: {}]   ;;  %s2025_s1 = inlined_call_operand.vmem [shape: f32[32,4], index: 1, kind: input, shape index: {}]   ;;  %s2026_s2 = inlined_call_operand.vmem [shape: f32[32,4], index: 2, kind: input, shape index: {}]   ;;  %s2027_s3 = inlined_call_operand.vmem [shape: f32[15], index: 3, kind: input, shape index: {}]   ;;  %s2028_s4 = inlined_call_operand.hbm [shape: f32[2,8,256], index: 4, kind: output, shape index: {}]  }
   0x1   :  { %10 = vsyncpa [#allocation3], 0 }
   0x2   :  { %12 = vsyncpa [#allocation3 + $0x1], 0  ;;  %s1342_s15 = smov 0   ;;  %s1344_s16 = smov 0  }
   0x3   :  { %s1346_s17 = smov 0   ;;  %s1348_s18 = smov 0  }
   0x4   :  { %s1350_s19 = smov 0   ;;  %s1352_s20 = smov 0  }
   0x5 LB: > { %s1077_s21 = sadd.s32 4294967295, %s1309_s20   ;;  %s1078_s22 = sadd.s32 4294967294, %s1309_s20   ;;  %s1309_s20 = sphi %s1352_s20, %s18_s20   ;;  %s1305_s19 = sphi %s1350_s19, %s2062_s19   ;;  %s1301_s18 = sphi %s1348_s18, %s2061_s18   ;;  %s1297_s17 = sphi %s1346_s17, %s2060_s17   ;;  %s1293_s16 = sphi %s1344_s16, %s2059_s16   ;;  %s1289_s15 = sphi %s1342_s15, %s2058_s15  }
   0x6   : > { %s30_s23 = sadd.s32 1, %s1305_s19  ;;  %s130_s24 = sadd.s32 1, %s1297_s17 }
   0x7   : > { %p32_p0 = scmp.ge.s32.totalorder %s30_s23, 2  ;;  %p140_p1 = scmp.ne.s32.totalorder %s1297_s17, %s1293_s16 }
   0x8   : > { %p141_p2 = scmp.eq.s32.totalorder %s1077_s21, 1  ;;  %p146_p3 = scmp.ne.s32.totalorder %s1293_s16, %s1289_s15 }
   0x9   : > { %s2064_s23 = smov (%p32_p0, %s30_s23), 0  ;;  %p147_p5 = scmp.eq.s32.totalorder %s1078_s22, 1 }
   0xa   : > { %p1382_p4 = por %p141_p2, %p140_p1  ;;  %s125_s26 = ssub.s32 %s1305_s19, %s2064_s23 }
   0xb   : > { %p1079_p6 = scmp.ge.s32.totalorder %s1309_s20, 1  ;;  %p128_p7 = scmp.eq.s32.totalorder %s125_s26, 0 }
   0xc   : > { %p1389_p8 = por %p147_p5, %p146_p3  ;;  %p154_p9 = scmp.lt.s32.totalorder %s1309_s20, 3 }
   0xd   : > { %s1395_s28 = scalar_select %p128_p7, %s1297_s17, %s130_s24  }
   0xe   : > { %p1397_p10 = pnand %p1079_p6, %p154_p9  ;;  %p1401_p11 = scmp.eq.s32.totalorder %s1077_s21, 0 }
   0xf   : > { %s173_s7 = sshll.u32 %s2027_s3, 4  ;;  %s174_s7 = int_to_ptr.vmem [resolvable:$true] %s173_s7 }
  0x10   : > { %p1114_p12 = pneg %p1397_p10  ;;  %s1214_s8 = scalar_lea.vmem %s174_s7, 16 }
  0x11   : > { %p1215_p0 = scmp.ne.s32.totalorder %s174_s7, %s1214_s8  ;;  %p1222_p5 = scmp.lt.s32.totalorder %s174_s7, %s174_s7 }
  0x12   : > { %p1115_p13 = pnand %p1401_p11, %p1114_p12  ;;  %p1223_p6 = scmp.lt.s32.totalorder %s1214_s8, %s1214_s8 }
  0x14   : > { %p1216_p1 = pneg %p1115_p13  ;;  %p1224_p7 = por %p1223_p6, %p1222_p5 }
  0x16   : > { %p1217_p2 = pnand %p1216_p1, %p1215_p0 }
  0x18   : > { %p1218_p3 = pneg %p1217_p2 }
  0x1a   : > { %p1225_p9 = pnand %p1224_p7, %p1218_p3 }
  0x1c   : > { %1228 = shalt.err (!%p1225_p9)
}
  0x1d   : > { %s1311_s9 = smov [#allocation2]   ;;  %199 = sbr.rel (%p1397_p10) target bundleno = 321 (0x141), region = 36 }
  0x1e   : > { %1117 = dma.vmem_to_smem (!%p1115_p13), %s174_s7, 16, %s1311_s9, [#allocation4]  }
  0x22   : > { %1280 = dma.done.wait (%p1401_p11), [#allocation4], 16  }
  0x23   : > { %1282 = vsyncadd (%p1401_p11), [#allocation4], 4294967280 }
  0x24   : > { %205 = sfence }
  0x25   : > { %s305_s10 = sld [smem:[#allocation2]]  ;;  %v1312_v0 = vmov 0   ;;  %v1423_v1 = vld [vmem:[%s2025_s1 + $0x10] sm:$0xff]  ;;  %v1428_v2 = vld [vmem:[%s2025_s1] sm:$0xff]  ;;  %v1433_v4 = vld [vmem:[%s2025_s1 + $0x18] sm:$0xff]  ;;  %v1313_v20 = vmov 1  }
  0x26   : > { %1179 = vset.pattern.permute.xlu1 %v1312_v0  ;;  %1178 = vset.pattern.permute.xlu0 %v1312_v0  ;;  %s1087_s11 = sld [smem:[#allocation2 + $0x4]]  ;;  %v1438_v5 = vld [vmem:[%s2025_s1 + $0x8] sm:$0xff]  ;;  %v1460_v17 = vld [vmem:[%s2026_s2 + $0x10] sm:$0xff]  ;;  %v1467_v19 = vld [vmem:[%s2026_s2] sm:$0xff]  ;;  %v1314_v43 = vmov 2   ;;  %p231_p10 = scmp.lt.s32.totalorder %s1301_s18, 1 }
  0x27   : > { %s1089_s12 = sld [smem:[#allocation2 + $0x1]]  ;;  %v1451_v12 = vld [vmem:[%s2026_s2 + $0x8] sm:$0xff]  ;;  %v304_v35 = vld [vmem:[%s2026_s2 + $0x18] sm:$0xff]  ;;  %v1315_v52 = vmov 3   ;;  %vm245_vm0 = vcmask 1043456   ;;  %s1107_s22 = sshll.u32 %s1301_s18, 8 }
  0x28   : > { %s1096_s5 = sld [smem:[#allocation2 + $0x7]] }
  0x29   : > { %s1090_s8 = sld [smem:[#allocation2 + $0x5]] }
  0x2a   : > { %s1092_s13 = sld [smem:[#allocation2 + $0x2]] }
  0x2b   : > { %v308_v3 = vstv %s305_s10  ;;  %s1093_s14 = sld [smem:[#allocation2 + $0x6]] }
  0x2c   : > { %v311_v6 = vmul.f32 %v308_v3, %v1423_v1  ;;  %v309_v7 = vmul.f32 %v308_v3, %v1428_v2  ;;  %v1442_v8 = vstv %s1087_s11  ;;  %v312_v9 = vmul.f32 %v308_v3, %v1433_v4  ;;  %s1095_s24 = sld [smem:[#allocation2 + $0x3]] }
  0x2d   : > { %v310_v10 = vmul.f32 %v308_v3, %v1438_v5  ;;  %v315_v11 = vmul.f32 %v1442_v8, %v1438_v5  ;;  %v449_v13 = vstv %s1089_s12  ;;  %v316_v15 = vmul.f32 %v1442_v8, %v1423_v1  ;;  %s232_s26 = scalar_select %p231_p10, %s1301_s18, 1 }
  0x2e   : > { %353 = vperm.xlu1 %1179, %v311_v6   ;;  %343 = vperm.xlu0 %1178, %v309_v7   ;;  %v451_v16 = vmul.f32 %v449_v13, %v1438_v5  ;;  %v314_v18 = vmul.f32 %v1442_v8, %v1428_v2  ;;  %v1470_v22 = vstv %s1096_s5  ;;  %v450_v28 = vmul.f32 %v449_v13, %v1428_v2  ;;  %s1088_s7 = sld [smem:[#allocation2 + $0x8]]  ;;  %s1982_s5 = scalar_lea.hbm %s2028_s4, %s1107_s22 }
  0x2f   : > { %v319_v14 = vsub.f32 %v1451_v12, %v315_v11  ;;  %v320_v21 = vsub.f32 %v1460_v17, %v316_v15  ;;  %v1474_v23 = vmul.f32 %v1470_v22, %v1438_v5  ;;  %v454_v25 = vstv %s1090_s8  ;;  %s1106_s29 = sshll.u32 %s232_s26, 3  ;;  %s1091_s8 = sld [smem:[#allocation2 + $0x9]] }
  0x30   : > { %v318_v24 = vsub.f32 %v1467_v19, %v314_v18  ;;  %v1481_v27 = vmul.f32 %v1470_v22, %v1423_v1  ;;  %v456_v29 = vmul.f32 %v454_v25, %v1438_v5  ;;  %v452_v31 = vmul.f32 %v449_v13, %v1423_v1  ;;  %s238_s6 = scalar_lea.vmem %s2024_s0, %s1106_s29  ;;  %s1557_s9 = sld [smem:[#allocation2 + $0xa]] }
  0x31   : > { %v740_v26 = vsub.f32 %v1451_v12, %v1474_v23  ;;  %v455_v32 = vmul.f32 %v454_v25, %v1428_v2  ;;  %v458_v34 = vmul.f32 %v454_v25, %v1433_v4  ;;  %v589_v37 = vstv %s1092_s13  ;;  %v241_v59 = vld [vmem:[%s238_s6] sm:$0xff]  ;;  %s1563_s10 = sld [smem:[#allocation2 + $0xb]]  ;;  %s1316_s18 = smov [#allocation5]  }
  0x32   : > { %358 = vperm.xlu1 %1179, %v312_v9   ;;  %348 = vperm.xlu0 %1178, %v310_v10   ;;  %v741_v30 = vsub.f32 %v1460_v17, %v1481_v27  ;;  %v460_v33 = vsub.f32 %v1451_v12, %v456_v29  ;;  %v590_v39 = vmul.f32 %v589_v37, %v1428_v2  ;;  %v594_v40 = vstv %s1093_s14  ;;  %s1569_s11 = sld [smem:[#allocation2 + $0xc]]  ;;  %s227_s14 = sand.u32 1, %s1293_s16  }
  0x33   : > { %v459_v36 = vsub.f32 %v1467_v19, %v455_v32  ;;  %v462_v38 = vsub.f32 %v304_v35, %v458_v34  ;;  %v592_v41 = vmul.f32 %v589_v37, %v1423_v1  ;;  %v598_v42 = vmul.f32 %v594_v40, %v1433_v4  ;;  %s1945_s12 = sld [smem:[#allocation2 + $0xd]]  ;;  %s1084_s21 = sshll.u32 %s227_s14, 4 }
  0x34   : > { %v591_v44 = vmul.f32 %v589_v37, %v1438_v5  ;;  %v453_v46 = vmul.f32 %v449_v13, %v1433_v4  ;;  %v457_v47 = vmul.f32 %v454_v25, %v1423_v1  ;;  %v729_v48 = vstv %s1095_s24  ;;  %s1972_s13 = sld [smem:[#allocation2 + $0xe]]  ;;  %s229_s24 = scalar_lea.vmem [#allocation5], %s1084_s21 }
  0x35   : > { %v602_v45 = vsub.f32 %v304_v35, %v598_v42  ;;  %v730_v49 = vmul.f32 %v729_v48, %v1428_v2  ;;  %v595_v51 = vmul.f32 %v594_v40, %v1428_v2  ;;  %v732_v53 = vmul.f32 %v729_v48, %v1423_v1  ;;  %s989_s26 = sshll.u32 %s229_s24, 4  ;;  %s973_s6 = scalar_lea.sflag [#allocation3], %s227_s14  ;;  %s990_s26 = int_to_ptr.vmem [resolvable:$true] %s989_s26 }
  0x36   : > { %1180 = vset.pattern.permute.xlu1 %v1313_v20  ;;  %376 = vperm.xlu0 %1178, %v319_v14   ;;  %v461_v50 = vsub.f32 %v1460_v17, %v457_v47  ;;  %v738_v54 = vmul.f32 %v1470_v22, %v1433_v4  ;;  %v596_v56 = vmul.f32 %v594_v40, %v1438_v5  ;;  %v246_v3 = vsel %vm245_vm0, %v241_v59, 0.0 }
  0x37   : > { %488 = vperm.xlu1 %1180, %v451_v16   ;;  %v599_v55 = vsub.f32 %v1467_v19, %v595_v51  ;;  %v731_v60 = vmul.f32 %v729_v48, %v1438_v5  ;;  %v317_v61 = vmul.f32 %v1442_v8, %v1433_v4  ;;  %v243_v62 = vcombine.high %v241_v59, %v241_v59 }
  0x38   : > { %v742_v57 = vsub.f32 %v304_v35, %v738_v54  ;;  %v600_v58 = vsub.f32 %v1451_v12, %v596_v56  ;;  %v247_v7 = vrot.slane %v246_v3, 4  ;;  %v593_v10 = vmul.f32 %v589_v37, %v1433_v4 }
  0x39   : > { %v321_v63 = vsub.f32 %v304_v35, %v317_v61  ;;  %v253_v6 = vsel %vm245_vm0, %v243_v62, 0.0  ;;  %v597_v5 = vmul.f32 %v594_v40, %v1423_v1  ;;  %v735_v14 = vmul.f32 %v1470_v22, %v1428_v2 }
  0x3a   : > { %381 = vperm.xlu0 %1178, %v320_v21   ;;  %v254_v9 = vrot.slane %v253_v6, 4  ;;  %v248_v8 = vadd.f32 %v247_v7, %v246_v3 }
  0x3b   : > { %1181 = vset.pattern.permute.xlu1 %v1312_v0  ;;  %v601_v13 = vsub.f32 %v1460_v17, %v597_v5 }
  0x3c   : > { %371 = vperm.xlu1 %1181, %v318_v24   ;;  %v255_v11 = vadd.f32 %v254_v9, %v253_v6  ;;  %v249_v15 = vrot.slane %v248_v8, 2  ;;  %v733_v24 = vmul.f32 %v729_v48, %v1433_v4 }
  0x3e   : > { %1184 = vset.pattern.permute.xlu0 %v1313_v20  ;;  %v256_v16 = vrot.slane %v255_v11, 2  ;;  %v250_v18 = vadd.f32 %v249_v15, %v248_v8 }
  0x3f   : > { %483 = vperm.xlu0 %1184, %v450_v28  }
  0x40   : > { %1182 = vset.pattern.permute.xlu1 %v1313_v20  ;;  %v251_v21 = vrot.slane %v250_v18, 1 }
  0x41   : > { %493 = vperm.xlu1 %1182, %v452_v31  }
  0x42   : > { %v252_v25 = vadd.f32 %v251_v21, %v250_v18 }
  0x43   : > { %516 = vperm.xlu0 %1184, %v460_v33  }
  0x44   : > { %v261_v2 = vmul.f32 0.25, %v252_v25 }
  0x45   : > { %511 = vperm.xlu1 %1182, %v459_v36  }
  0x47   : > { %526 = vperm.xlu0 %1184, %v462_v38  }
  0x49   : > { %1183 = vset.pattern.permute.xlu1 %v1314_v43 }
  0x4a   : > { %623 = vperm.xlu1 %1183, %v590_v39  }
  0x4b   : > { %1189 = vset.pattern.permute.xlu0 %v1314_v43 }
  0x4c   : > { %633 = vperm.xlu0 %1189, %v592_v41  }
  0x4e   : > { %628 = vperm.xlu1 %1183, %v591_v44  }
  0x50   : > { %666 = vperm.xlu0 %1189, %v602_v45  }
  0x52   : > { %1185 = vset.pattern.permute.xlu1 %v1313_v20  ;;  %v257_v20 = vadd.f32 %v256_v16, %v255_v11 }
  0x53   : > { %498 = vperm.xlu1 %1185, %v453_v46  }
  0x54   : > { %1192 = vset.pattern.permute.xlu0 %v1315_v52  ;;  %v258_v1 = vrot.slane %v257_v20, 1 }
  0x55   : > { %763 = vperm.xlu0 %1192, %v730_v49  }
  0x56   : > { %v259_v28 = vadd.f32 %v258_v1, %v257_v20 }
  0x57   : > { %521 = vperm.xlu1 %1185, %v461_v50  }
  0x58   : > { %v262_v22 = vmul.f32 0.25, %v259_v28 }
  0x59   : > { %773 = vperm.xlu0 %1192, %v732_v53   ;;  %v323_v53 = vlaneseq }
  0x5b   : > { %1186 = vset.pattern.permute.xlu1 %v1314_v43 }
  0x5c   : > { %651 = vperm.xlu1 %1186, %v599_v55  }
  0x5d   : > { %806 = vperm.xlu0 %1192, %v742_v57   ;;  %v324_v57 = vshrl.u32 %v323_v53, 7 }
  0x5f   : > { %v325_v61 = vsub.s32 0, %v324_v57  ;;  %v329_v62 = vsub.s32 4, %v324_v57  ;;  %v465_v6 = vsub.s32 1, %v324_v57  ;;  %v605_v16 = vsub.s32 2, %v324_v57 }
  0x60   : > { %656 = vperm.xlu1 %1186, %v600_v58   ;;  %v745_v25 = vsub.s32 3, %v324_v57  ;;  %v749_v28 = vsub.s32 7, %v324_v57 }
  0x64   : > { %1187 = vset.pattern.permute.xlu1 %v1315_v52 }
  0x65   : > { %768 = vperm.xlu1 %1187, %v731_v60  }
  0x69   : > { %1188 = vset.pattern.permute.xlu1 %v1312_v0  ;;  %v739_v0 = vsub.f32 %v1467_v19, %v735_v14  ;;  %v265_v19 = vcombine.low %v261_v2, %v262_v22  ;;  %v1565_v2 = vstv %s1088_s7  ;;  %s1229_s7 = scalar_lea.vmem %s990_s26, 256 }
  0x6a   : > { %386 = vperm.xlu1 %1188, %v321_v63   ;;  %2040 = vst [vmem:[#allocation8_spill] sm:$0xff] %v1565_v2  ;;  %p1230_p11 = scmp.ne.s32.totalorder %s990_s26, %s1229_s7 }
  0x6b   : > { %v267_v29 = vsub.f32 %v241_v59, %v265_v19 }
  0x6c   : > { %p1231_p12 = pnand %p1230_p11, %p1382_p4 }
  0x6d   : > { %v268_v31 = vmul.f32 %v267_v29, %v267_v29 }
  0x6e   : > { %1190 = vset.pattern.permute.xlu1 %v1314_v43  ;;  %p1232_p13 = pneg %p1231_p12 }
  0x6f   : > { %638 = vperm.xlu1 %1190, %v593_v10   ;;  %v270_v32 = vcombine.high %v268_v31, %v268_v31  ;;  %v272_v33 = vsel %vm245_vm0, %v268_v31, 0.0  ;;  %v469_v10 = vsub.s32 5, %v324_v57 }
  0x70   : > { %v273_v23 = vrot.slane %v272_v33, 4 }
  0x71   : > { %v279_v12 = vsel %vm245_vm0, %v270_v32, 0.0 }
  0x72   : > { %v274_v4 = vadd.f32 %v273_v23, %v272_v33 }
  0x73   : > { %661 = vperm.xlu1 %1190, %v601_v13  }
  0x74   : > { %v275_v35 = vrot.slane %v274_v4, 2 }
  0x76   : > { %v276_v37 = vadd.f32 %v275_v35, %v274_v4 }
  0x77   : > { %1191 = vset.pattern.permute.xlu1 %v1315_v52 }
  0x78   : > { %791 = vperm.xlu1 %1191, %v739_v0   ;;  %v277_v39 = vrot.slane %v276_v37, 1  ;;  %v609_v0 = vsub.s32 6, %v324_v57 }
  0x7a   : > { %v278_v27 = vadd.f32 %v277_v39, %v276_v37 }
  0x7c   : > { %796 = vperm.xlu1 %1191, %v740_v26   ;;  %v280_v26 = vrot.slane %v279_v12, 4  ;;  %v286_v42 = vmul.f32 0.25, %v278_v27  ;;  %v1584_v27 = vstv %s1557_s9 }
  0x7e   : > { %v281_v34 = vadd.f32 %v280_v26, %v279_v12  ;;  %v288_v45 = vadd.f32 1e-05, %v286_v42 }
  0x80   : > { %778 = vperm.xlu1 %1191, %v733_v24   ;;  %v282_v36 = vrot.slane %v281_v34, 2  ;;  %1194 = vrsqrt.f32 %v288_v45 }
  0x82   : > { %v283_v38 = vadd.f32 %v282_v36, %v281_v34  ;;  %v1577_v36 = vstv %s1091_s8  ;;  %s1233_s8 = sshll.u32 %s1316_s18, 4  ;;  %s1234_s8 = int_to_ptr.vmem [resolvable:$false] %s1233_s8 }
  0x83   : > { %s1235_s9 = scalar_lea.vmem %s1234_s8, 512  ;;  %p1236_p0 = scmp.lt.s32.totalorder %s990_s26, %s1234_s8 }
  0x84   : > { %801 = vperm.xlu1 %1191, %v741_v30   ;;  %v284_v17 = vrot.slane %v283_v38, 1  ;;  %p1237_p1 = scmp.lt.s32.totalorder %s1235_s9, %s1229_s7 }
  0x86   : > { %v285_v30 = vadd.f32 %v284_v17, %v283_v38  ;;  %p1238_p2 = por %p1237_p1, %p1236_p0 }
  0x88   : > { %v287_v43 = vmul.f32 0.25, %v285_v30  ;;  %p1239_p3 = pnand %p1238_p2, %p1232_p13 }
  0x8a   : > { %v289_v46 = vadd.f32 1e-05, %v287_v43 }
  0x8c   : > { %1196 = vrsqrt.f32 %v289_v46 }
  0x8d   : > { %v1195_v52 = vpop.eup %1194 }
  0x99   : > { %v1197_v56 = vpop.eup %1196 }
  0x9a   : > { %v294_v58 = vcombine.low %v1195_v52, %v1197_v56 }
  0x9c   : > { %v296_v63 = vmul.f32 %v294_v58, %v267_v29 }
  0x9e   : > { %v326_v7 = vrot.slane %v296_v63, %v325_v61  ;;  %v330_v9 = vrot.slane %v296_v63, %v329_v62  ;;  %v466_v11 = vrot.slane %v296_v63, %v465_v6  ;;  %v470_v15 = vrot.slane %v296_v63, %v469_v10 }
  0x9f   : > { %v606_v31 = vrot.slane %v296_v63, %v605_v16  ;;  %v610_v32 = vrot.slane %v296_v63, %v609_v0  ;;  %v746_v37 = vrot.slane %v296_v63, %v745_v25  ;;  %v750_v38 = vrot.slane %v296_v63, %v749_v28 }
  0xa0   : > { %v336_v13 = vrot.slane %v326_v7, %v325_v61  ;;  %v340_v14 = vrot.slane %v330_v9, %v325_v61  ;;  %v1561_v24 = vrot.slane %v466_v11, %v465_v6  ;;  %v1567_v22 = vrot.slane %v470_v15, %v465_v6 }
  0xa1   : > { %v1587_v43 = vrot.slane %v606_v31, %v605_v16  ;;  %v1589_v45 = vrot.slane %v610_v32, %v605_v16  ;;  %v1598_v57 = vrot.slane %v746_v37, %v745_v25  ;;  %v1600_v58 = vrot.slane %v750_v38, %v745_v25 }
  0xa2   : > { %v1607_v62 = vstv %s1563_s10 }
  0xa3   : > { %2041 = vst [vmem:[#allocation9_spill] sm:$0xff] %v1607_v62 }
  0xa9   : > { %v354_v40 = vpop.permute.xlu1 %353  ;;  %v344_v48 = vpop.permute.xlu0 %343 }
  0xaa   : > { %v365_v19 = vmul.f32 %v354_v40, %v336_v13  ;;  %v361_v29 = vmul.f32 %v344_v48, %v336_v13  ;;  %v366_v33 = vmul.f32 %v354_v40, %v340_v14  ;;  %v362_v12 = vmul.f32 %v344_v48, %v340_v14 }
  0xad   : > { %v1537_v41 = vpop.permute.xlu1 %358  ;;  %v349_v50 = vpop.permute.xlu0 %348 }
  0xae   : > { %v363_v18 = vmul.f32 %v349_v50, %v336_v13  ;;  %v364_v20 = vmul.f32 %v349_v50, %v340_v14  ;;  %v1613_v63 = vmul.f32 %v1537_v41, %v336_v13  ;;  %v1616_v6 = vmul.f32 %v1537_v41, %v340_v14 }
  0xb1   : > { %v377_v54 = vpop.permute.xlu0 %376 }
  0xb2   : > { %v1539_v44 = vpop.permute.xlu1 %488  ;;  %v391_v23 = vsub.f32 %v363_v18, %v377_v54  ;;  %v392_v26 = vsub.f32 %v364_v20, %v377_v54 }
  0xb3   : > { %v503_v35 = vmul.f32 %v1539_v44, %v1561_v24  ;;  %v504_v39 = vmul.f32 %v1539_v44, %v1567_v22 }
  0xb4   : > { %v399_v46 = vmax.f32 %v391_v23, 0.0  ;;  %v400_v48 = vmax.f32 %v392_v26, 0.0 }
  0xb5   : > { %v1551_v60 = vpop.permute.xlu0 %381 }
  0xb6   : > { %v393_v17 = vsub.f32 %v365_v19, %v1551_v60  ;;  %v394_v40 = vsub.f32 %v366_v33, %v1551_v60  ;;  %v415_v10 = vmul.f32 %v399_v46, %v399_v46  ;;  %v1619_v16 = vmul.f32 %v1565_v2, %v399_v46 }
  0xb7   : > { %v1541_v47 = vpop.permute.xlu1 %371  ;;  %v1622_v0 = vmul.f32 %v1565_v2, %v400_v48 }
  0xb8   : > { %v389_v30 = vsub.f32 %v361_v29, %v1541_v47  ;;  %v390_v50 = vsub.f32 %v362_v12, %v1541_v47  ;;  %v1602_v60 = vmax.f32 %v393_v17, 0.0  ;;  %v1604_v61 = vmax.f32 %v394_v40, 0.0 }
  0xb9   : > { %v1610_v47 = vstv %s1569_s11 }
  0xba   : > { %v484_v5 = vpop.permute.xlu0 %483  ;;  %2042 = vst [vmem:[#allocation10_spill] sm:$0xff] %v1610_v47  ;;  %v397_v7 = vmax.f32 %v389_v30, 0.0  ;;  %v398_v11 = vmax.f32 %v390_v50, 0.0  ;;  %v1628_v41 = vmul.f32 %v1602_v60, %v1602_v60  ;;  %v1632_v14 = vmul.f32 %v1604_v61, %v1604_v61 }
  0xbb   : > { %v501_v53 = vmul.f32 %v484_v5, %v1561_v24  ;;  %v502_v54 = vmul.f32 %v484_v5, %v1567_v22  ;;  %v416_v5 = vmul.f32 %v400_v48, %v400_v48  ;;  %v1636_v20 = vmul.f32 %v1565_v2, %v1602_v60 }
  0xbc   : > { %v1543_v49 = vpop.permute.xlu1 %493  ;;  %v414_v32 = vmul.f32 %v398_v11, %v398_v11  ;;  %v1651_v33 = vmul.f32 %v1565_v2, %v397_v7  ;;  %v1656_v26 = vmul.f32 %v1565_v2, %v398_v11 }
  0xbd   : > { %2043 = vst [vmem:[#allocation11_spill] sm:$0xff] %v1636_v20  ;;  %v505_v12 = vmul.f32 %v1543_v49, %v1561_v24 }
  0xbe   : > { %v517_v21 = vpop.permute.xlu0 %516  ;;  %2045 = vst [vmem:[#allocation13_spill] sm:$0xff] %v1656_v26 }
  0xbf   : > { %v531_v42 = vsub.f32 %v503_v35, %v517_v21  ;;  %v532_v44 = vsub.f32 %v504_v39, %v517_v21  ;;  %v1640_v21 = vmul.f32 %v1565_v2, %v1604_v61  ;;  %v506_v35 = vmul.f32 %v1543_v49, %v1567_v22 }
  0xc0   : > { %v1545_v51 = vpop.permute.xlu1 %511 }
  0xc1   : > { %v539_v9 = vmax.f32 %v531_v42, 0.0  ;;  %v540_v15 = vmax.f32 %v532_v44, 0.0  ;;  %v529_v18 = vsub.f32 %v501_v53, %v1545_v51  ;;  %v530_v13 = vsub.f32 %v502_v54, %v1545_v51  ;;  %2044 = vst [vmem:[#allocation12_spill] sm:$0xff] %v1640_v21 }
  0xc2   : > { %v1571_v4 = vpop.permute.xlu0 %526  ;;  %v413_v51 = vmul.f32 %v397_v7, %v397_v7 }
  0xc3   : > { %v555_v19 = vmul.f32 %v539_v9, %v539_v9  ;;  %v556_v23 = vmul.f32 %v540_v15, %v540_v15  ;;  %v537_v37 = vmax.f32 %v529_v18, 0.0  ;;  %v1660_v38 = vmax.f32 %v530_v13, 0.0 }
  0xc4   : > { %v1662_v39 = vadd.f32 %v539_v9, %v399_v46  ;;  %v1667_v17 = vmul.f32 %v1577_v36, %v539_v9  ;;  %v1673_v30 = vmul.f32 %v1577_v36, %v540_v15 }
  0xc5   : > { %v1547_v55 = vpop.permute.xlu1 %623  ;;  %v1677_v50 = vadd.f32 %v556_v23, %v416_v5  ;;  %v545_v54 = vadd.f32 %v537_v37, %v397_v7  ;;  %v553_v9 = vmul.f32 %v537_v37, %v537_v37  ;;  %v1696_v7 = vmul.f32 %v1577_v36, %v537_v37 }
  0xc6   : > { %v641_v46 = vmul.f32 %v1547_v55, %v1587_v43 }
  0xc7   : > { %v1592_v52 = vpop.permute.xlu0 %633 }
  0xc9   : > { %v1549_v59 = vpop.permute.xlu1 %628 }
  0xca   : > { %v644_v5 = vmul.f32 %v1549_v59, %v1589_v45 }
  0xcb   : > { %v1644_v28 = vpop.permute.xlu0 %666 }
  0xce   : > { %v1553_v3 = vpop.permute.xlu1 %498 }
  0xcf   : > { %v507_v29 = vmul.f32 %v1553_v3, %v1561_v24  ;;  %v508_v31 = vmul.f32 %v1553_v3, %v1567_v22  ;;  %v1664_v3 = vadd.f32 %v540_v15, %v400_v48  ;;  %v1670_v24 = vadd.f32 %v555_v19, %v415_v10 }
  0xd0   : > { %v642_v48 = vmul.f32 %v1547_v55, %v1589_v45  ;;  %v764_v53 = vpop.permute.xlu0 %763  ;;  %v554_v10 = vmul.f32 %v1660_v38, %v1660_v38 }
  0xd1   : > { %v535_v42 = vsub.f32 %v507_v29, %v1571_v4  ;;  %v536_v49 = vsub.f32 %v508_v31, %v1571_v4  ;;  %v643_v4 = vmul.f32 %v1549_v59, %v1587_v43  ;;  %v781_v37 = vmul.f32 %v764_v53, %v1598_v57 }
  0xd2   : > { %v1555_v8 = vpop.permute.xlu1 %521  ;;  %v562_v23 = vadd.f32 %v554_v10, %v414_v32 }
  0xd3   : > { %v533_v40 = vsub.f32 %v505_v12, %v1555_v8  ;;  %v534_v44 = vsub.f32 %v506_v35, %v1555_v8  ;;  %v546_v8 = vadd.f32 %v1660_v38, %v398_v11  ;;  %v1698_v13 = vmax.f32 %v535_v42, 0.0 }
  0xd4   : > { %v1700_v19 = vmax.f32 %v536_v49, 0.0  ;;  %v561_v11 = vadd.f32 %v553_v9, %v413_v51  ;;  %v1714_v35 = vmul.f32 %v1592_v52, %v1589_v45 }
  0xd5   : > { %v1690_v15 = vmax.f32 %v533_v40, 0.0  ;;  %v1704_v31 = vmax.f32 %v534_v44, 0.0  ;;  %v559_v51 = vmul.f32 %v1698_v13, %v1698_v13 }
  0xd6   : > { %v560_v32 = vmul.f32 %v1700_v19, %v1700_v19 }
  0xd7   : > { %v1559_v1 = vpop.permute.xlu1 %651  ;;  %v557_v40 = vmul.f32 %v1690_v15, %v1690_v15  ;;  %v558_v44 = vmul.f32 %v1704_v31, %v1704_v31 }
  0xd8   : > { %v669_v18 = vsub.f32 %v641_v46, %v1559_v1  ;;  %v670_v55 = vsub.f32 %v642_v48, %v1559_v1  ;;  %v1710_v1 = vmul.f32 %v1592_v52, %v1587_v43  ;;  %v774_v46 = vpop.permute.xlu0 %773 }
  0xd9   : > { %v1729_v52 = vmul.f32 %v774_v46, %v1598_v57  ;;  %v1732_v48 = vmul.f32 %v774_v46, %v1600_v58 }
  0xda   : > { %v1719_v42 = vmax.f32 %v669_v18, 0.0  ;;  %v1721_v49 = vmax.f32 %v670_v55, 0.0  ;;  %v1748_v18 = vadd.f32 %v1704_v31, %v1604_v61 }
  0xdb   : > { %v1573_v34 = vpop.permute.xlu1 %656 }
  0xdc   : > { %v671_v59 = vsub.f32 %v643_v4, %v1573_v34  ;;  %v672_v12 = vsub.f32 %v644_v5, %v1573_v34  ;;  %v782_v34 = vmul.f32 %v764_v53, %v1600_v58  ;;  %v1744_v5 = vadd.f32 %v1690_v15, %v1602_v60 }
  0xdd   : > { %v694_v46 = vmul.f32 %v1721_v49, %v1721_v49 }
  0xde   : > { %v1736_v9 = vmax.f32 %v671_v59, 0.0  ;;  %v1738_v10 = vmax.f32 %v672_v12, 0.0  ;;  %v1754_v12 = vadd.f32 %v557_v40, %v1628_v41 }
  0xe0   : > { %v1596_v56 = vpop.permute.xlu1 %768  ;;  %v695_v41 = vmul.f32 %v1736_v9, %v1736_v9  ;;  %v696_v40 = vmul.f32 %v1738_v10, %v1738_v10  ;;  %v687_v20 = vadd.f32 %v1736_v9, %v1662_v39 }
  0xe1   : > { %v783_v61 = vmul.f32 %v1596_v56, %v1598_v57  ;;  %v784_v47 = vmul.f32 %v1596_v56, %v1600_v58 }
  0xe5   : > { %v1642_v25 = vpop.permute.xlu1 %386 }
  0xe6   : > { %v395_v53 = vsub.f32 %v1613_v63, %v1642_v25  ;;  %v396_v55 = vsub.f32 %v1616_v6, %v1642_v25  ;;  %v693_v63 = vmul.f32 %v1719_v42, %v1719_v42 }
  0xe8   : > { %v1772_v62 = vmax.f32 %v395_v53, 0.0 }
  0xea   : > { %v639_v22 = vpop.permute.xlu1 %638 }
  0xeb   : > { %v647_v59 = vmul.f32 %v639_v22, %v1587_v43  ;;  %v648_v60 = vmul.f32 %v639_v22, %v1589_v45  ;;  %v1766_v43 = vadd.f32 %v558_v44, %v1632_v14  ;;  %v1774_v22 = vmax.f32 %v396_v55, 0.0 }
  0xec   : > { %v686_v14 = vadd.f32 %v1721_v49, %v546_v8  ;;  %v688_v55 = vadd.f32 %v1738_v10, %v1664_v3  ;;  %v704_v8 = vadd.f32 %v696_v40, %v1677_v50 }
  0xed   : > { %v675_v2 = vsub.f32 %v647_v59, %v1644_v28  ;;  %v676_v44 = vsub.f32 %v648_v60, %v1644_v28  ;;  %v419_v28 = vmul.f32 %v1772_v62, %v1772_v62  ;;  %v420_v39 = vmul.f32 %v1774_v22, %v1774_v22 }
  0xee   : > { %v1702_v29 = vpop.permute.xlu1 %661  ;;  %v552_v3 = vadd.f32 %v1700_v19, %v1774_v22 }
  0xef   : > { %v568_v40 = vadd.f32 %v560_v32, %v420_v39 }
  0xf3   : > { %v792_v4 = vpop.permute.xlu1 %791 }
  0xf4   : > { %v809_v6 = vsub.f32 %v781_v37, %v792_v4  ;;  %v810_v25 = vsub.f32 %v782_v34, %v792_v4  ;;  %v685_v37 = vadd.f32 %v1719_v42, %v545_v54  ;;  %v701_v34 = vadd.f32 %v693_v63, %v561_v11 }
  0xf5   : > { %v702_v4 = vadd.f32 %v694_v46, %v562_v23  ;;  %v1798_v11 = vmax.f32 %v675_v2, 0.0  ;;  %v551_v23 = vadd.f32 %v1698_v13, %v1772_v62 }
  0xf6   : > { %v1782_v53 = vmax.f32 %v809_v6, 0.0  ;;  %v1784_v26 = vmax.f32 %v810_v25, 0.0 }
  0xf7   : > { %v797_v45 = vpop.permute.xlu1 %796 }
  0xf8   : > { %v811_v21 = vsub.f32 %v783_v61, %v797_v45  ;;  %v812_v56 = vsub.f32 %v784_v47, %v797_v45  ;;  %2046 = vst [vmem:[#allocation14_spill] sm:$0xff] %v1782_v53  ;;  %2047 = vst [vmem:[#allocation15_spill] sm:$0xff] %v1784_v26  ;;  %v703_v47 = vadd.f32 %v695_v41, %v1670_v24 }
  0xf9   : > { %v673_v24 = vsub.f32 %v1710_v1, %v1702_v29  ;;  %v825_v50 = vadd.f32 %v1782_v53, %v685_v37  ;;  %v826_v63 = vadd.f32 %v1784_v26, %v686_v14  ;;  %v833_v46 = vmul.f32 %v1782_v53, %v1782_v53 }
  0xfa   : > { %v1789_v59 = vmax.f32 %v811_v21, 0.0  ;;  %v1791_v54 = vmax.f32 %v812_v56, 0.0  ;;  %v1804_v21 = vmax.f32 %v676_v44, 0.0  ;;  %v834_v2 = vmul.f32 %v1784_v26, %v1784_v26 }
  0xfb   : > { %v779_v60 = vpop.permute.xlu1 %778  ;;  %v567_v41 = vadd.f32 %v559_v51, %v419_v28  ;;  %v699_v45 = vmul.f32 %v1798_v11, %v1798_v11  ;;  %v674_v56 = vsub.f32 %v1714_v35, %v1702_v29  ;;  %v691_v37 = vadd.f32 %v1798_v11, %v551_v23 }
  0xfc   : > { %v827_v61 = vadd.f32 %v1789_v59, %v687_v20  ;;  %v828_v6 = vadd.f32 %v1791_v54, %v688_v55  ;;  %v835_v25 = vmul.f32 %v1789_v59, %v1789_v59  ;;  %v836_v1 = vmul.f32 %v1791_v54, %v1791_v54 }
  0xfd   : > { %v692_v20 = vadd.f32 %v1804_v21, %v552_v3  ;;  %v700_v55 = vmul.f32 %v1804_v21, %v1804_v21  ;;  %v1828_v26 = vmax.f32 %v673_v24, 0.0  ;;  %v841_v53 = vadd.f32 %v833_v46, %v701_v34 }
  0xfe   : > { %v843_v14 = vadd.f32 %v835_v25, %v703_v47  ;;  %v844_v44 = vadd.f32 %v836_v1, %v704_v8  ;;  %v842_v51 = vadd.f32 %v834_v2, %v702_v4  ;;  %v1830_v32 = vmul.f32 0.25, %v825_v50  ;;  %v807_v50 = vpop.permute.xlu0 %806 }
  0xff   : > { %v1832_v28 = vmul.f32 0.25, %v826_v63  ;;  %v1834_v39 = vmul.f32 0.25, %v827_v61  ;;  %v1836_v29 = vmul.f32 0.25, %v828_v6  ;;  %v707_v35 = vadd.f32 %v699_v45, %v567_v41  ;;  %v802_v3 = vpop.permute.xlu1 %801 }
 0x100   : > { %v1838_v23 = vmax.f32 %v674_v56, 0.0  ;;  %v787_v47 = vmul.f32 %v779_v60, %v1598_v57  ;;  %v788_v8 = vmul.f32 %v779_v60, %v1600_v58  ;;  %v879_v24 = vmul.f32 0.25, %v843_v14 }
 0x101   : > { %v880_v25 = vmul.f32 0.25, %v844_v44  ;;  %v887_v34 = vmul.f32 %v1834_v39, %v1834_v39  ;;  %v888_v4 = vmul.f32 %v1836_v29, %v1836_v29  ;;  %v708_v63 = vadd.f32 %v700_v55, %v568_v40 }
 0x102   : > { %v877_v46 = vmul.f32 0.25, %v841_v53  ;;  %v815_v2 = vsub.f32 %v787_v47, %v807_v50  ;;  %v816_v61 = vsub.f32 %v788_v8, %v807_v50  ;;  %v878_v6 = vmul.f32 0.25, %v842_v51 }
 0x103   : > { %v885_v57 = vmul.f32 %v1830_v32, %v1830_v32  ;;  %v886_v58 = vmul.f32 %v1832_v28, %v1832_v28  ;;  %v813_v60 = vsub.f32 %v1729_v52, %v802_v3  ;;  %v689_v1 = vadd.f32 %v1828_v26, %v1744_v5 }
 0x104   : > { %v697_v41 = vmul.f32 %v1828_v26, %v1828_v26  ;;  %v1855_v45 = vmax.f32 %v815_v2, 0.0  ;;  %v1857_v53 = vmax.f32 %v816_v61, 0.0  ;;  %v698_v40 = vmul.f32 %v1838_v23, %v1838_v23 }
 0x105   : > { %v895_v56 = vsub.f32 %v879_v24, %v887_v34  ;;  %v896_v14 = vsub.f32 %v880_v25, %v888_v4  ;;  %v814_v44 = vsub.f32 %v1732_v48, %v802_v3  ;;  %v690_v47 = vadd.f32 %v1838_v23, %v1748_v18 }
 0x106   : > { %2048 = vst [vmem:[#allocation16_spill] sm:$0xff] %v1857_v53  ;;  %v831_v55 = vadd.f32 %v1855_v45, %v691_v37  ;;  %v832_v52 = vadd.f32 %v1857_v53, %v692_v20  ;;  %v839_v5 = vmul.f32 %v1855_v45, %v1855_v45  ;;  %v840_v51 = vmul.f32 %v1857_v53, %v1857_v53 }
 0x107   : > { %v893_v8 = vsub.f32 %v877_v46, %v885_v57  ;;  %v894_v50 = vsub.f32 %v878_v6, %v886_v58  ;;  %v1870_v2 = vmax.f32 %v813_v60, 0.0  ;;  %v705_v20 = vadd.f32 %v697_v41, %v1754_v12 }
 0x108   : > { %v847_v24 = vadd.f32 %v839_v5, %v707_v35  ;;  %v848_v25 = vadd.f32 %v840_v51, %v708_v63  ;;  %v1872_v48 = vmul.f32 0.25, %v831_v55  ;;  %v1874_v37 = vmul.f32 0.25, %v832_v52 }
 0x109   : > { %v706_v3 = vadd.f32 %v698_v40, %v1766_v43  ;;  %v903_v34 = vmax.f32 %v895_v56, 0.0  ;;  %v1878_v4 = vmax.f32 %v814_v44, 0.0  ;;  %v904_v61 = vmax.f32 %v896_v14, 0.0 }
 0x10a   : > { %v883_v53 = vmul.f32 0.25, %v847_v24  ;;  %v884_v18 = vmul.f32 0.25, %v848_v25  ;;  %v891_v46 = vmul.f32 %v1872_v48, %v1872_v48  ;;  %v901_v6 = vmax.f32 %v893_v8, 0.0 }
 0x10b   : > { %v902_v35 = vmax.f32 %v894_v50, 0.0  ;;  %v892_v63 = vmul.f32 %v1874_v37, %v1874_v37  ;;  %v829_v57 = vadd.f32 %v1870_v2, %v689_v1  ;;  %v830_v12 = vadd.f32 %v1878_v4, %v690_v47 }
 0x10c   : > { %v899_v58 = vsub.f32 %v883_v53, %v891_v46  ;;  %v837_v43 = vmul.f32 %v1870_v2, %v1870_v2  ;;  %v838_v60 = vmul.f32 %v1878_v4, %v1878_v4  ;;  %v580_v41 = vadd.f32 %v1667_v17, %v1619_v16  ;;  %v2050_v46 = vld [vmem:[#allocation11_spill] sm:$0xff] }
 0x10d   : > { %v581_v40 = vadd.f32 %v1673_v30, %v1622_v0  ;;  %v911_v56 = vadd.f32 1e-05, %v903_v34  ;;  %v900_v14 = vsub.f32 %v884_v18, %v892_v63  ;;  %v571_v1 = vmul.f32 %v1577_v36, %v1660_v38  ;;  %v2051_v63 = vld [vmem:[#allocation12_spill] sm:$0xff] }
 0x10e   : > { %v912_v53 = vadd.f32 1e-05, %v904_v61  ;;  %v845_v44 = vadd.f32 %v837_v43, %v705_v20  ;;  %v846_v55 = vadd.f32 %v838_v60, %v706_v3  ;;  %v909_v52 = vadd.f32 1e-05, %v901_v6 }
 0x10f   : > { %v907_v5 = vmax.f32 %v899_v58, 0.0  ;;  %v1896_v51 = vmul.f32 0.25, %v829_v57  ;;  %v1898_v47 = vmul.f32 0.25, %v830_v12  ;;  %v578_v16 = vadd.f32 %v1696_v7, %v1651_v33  ;;  %v2049_v7 = vld [vmem:[#allocation13_spill] sm:$0xff] }
 0x110   : > { %v910_v17 = vadd.f32 1e-05, %v902_v35  ;;  %v908_v8 = vmax.f32 %v900_v14, 0.0  ;;  %v881_v0 = vmul.f32 0.25, %v845_v44  ;;  %v574_v30 = vmul.f32 %v1577_v36, %v1690_v15 }
 0x111   : > { %1198 = vrsqrt.f32 %v911_v56  ;;  %v882_v38 = vmul.f32 0.25, %v846_v55  ;;  %v889_v50 = vmul.f32 %v1896_v51, %v1896_v51  ;;  %v575_v24 = vmul.f32 %v1577_v36, %v1704_v31 }
 0x112   : > { %v710_v25 = vmul.f32 %v1584_v27, %v1719_v42  ;;  %1200 = vrsqrt.f32 %v912_v53  ;;  %v890_v33 = vmul.f32 %v1898_v47, %v1898_v47  ;;  %v579_v20 = vadd.f32 %v571_v1, %v2049_v7  ;;  %v2053_v53 = vld [vmem:[#allocation9_spill] sm:$0xff] }
 0x113   : > { %1202 = vrsqrt.f32 %v909_v52  ;;  %v915_v3 = vadd.f32 1e-05, %v907_v5  ;;  %v897_v15 = vsub.f32 %v881_v0, %v889_v50  ;;  %v712_v34 = vmul.f32 %v1584_v27, %v1736_v9  ;;  %v2052_v9 = vld [vmem:[#allocation8_spill] sm:$0xff] }
 0x114   : > { %1204 = vrsqrt.f32 %v910_v17  ;;  %v916_v61 = vadd.f32 1e-05, %v908_v8  ;;  %v898_v18 = vsub.f32 %v882_v38, %v890_v33  ;;  %v576_v31 = vmul.f32 %v1577_v36, %v1698_v13 }
 0x115   : > { %v577_v42 = vmul.f32 %v1577_v36, %v1700_v19  ;;  %v582_v6 = vadd.f32 %v574_v30, %v2050_v46  ;;  %v905_v35 = vmax.f32 %v897_v15, 0.0  ;;  %v583_v57 = vadd.f32 %v575_v24, %v2051_v63  ;;  %v2057_v15 = vld [vmem:[#allocation16_spill] sm:$0xff] }
 0x116   : > { %v711_v58 = vmul.f32 %v1584_v27, %v1721_v49  ;;  %v718_v12 = vadd.f32 %v710_v25, %v578_v16  ;;  %v906_v43 = vmax.f32 %v898_v18, 0.0  ;;  %v436_v60 = vmul.f32 %v2052_v9, %v1772_v62 }
 0x117   : > { %v437_v56 = vmul.f32 %v2052_v9, %v1774_v22  ;;  %1206 = vrsqrt.f32 %v915_v3  ;;  %v913_v13 = vadd.f32 1e-05, %v905_v35  ;;  %v713_v36 = vmul.f32 %v1584_v27, %v1738_v10 }
 0x118   : > { %v720_v19 = vadd.f32 %v712_v34, %v580_v41  ;;  %1208 = vrsqrt.f32 %v916_v61  ;;  %v914_v14 = vadd.f32 1e-05, %v906_v43  ;;  %v716_v1 = vmul.f32 %v1584_v27, %v1798_v11  ;;  %v2054_v11 = vld [vmem:[#allocation14_spill] sm:$0xff] }
 0x119   : > { %v717_v49 = vmul.f32 %v1584_v27, %v1804_v21  ;;  %v852_v62 = vmul.f32 %v2053_v53, %v1789_v59  ;;  %1210 = vrsqrt.f32 %v913_v13  ;;  %v714_v22 = vmul.f32 %v1584_v27, %v1828_v26  ;;  %v2055_v21 = vld [vmem:[#allocation10_spill] sm:$0xff]  ;;  %v2056_v26 = vld [vmem:[#allocation15_spill] sm:$0xff] }
 0x11a   : > { %v715_v44 = vmul.f32 %v1584_v27, %v1838_v23  ;;  %v853_v10 = vmul.f32 %v2053_v53, %v1791_v54  ;;  %1212 = vrsqrt.f32 %v914_v14  ;;  %v584_v41 = vadd.f32 %v576_v31, %v436_v60 }
 0x11b   : > { %v585_v55 = vadd.f32 %v577_v42, %v437_v56  ;;  %v850_v52 = vmul.f32 %v2053_v53, %v2054_v11  ;;  %v928_v5 = vmul.f32 %v2055_v21, %v1834_v39  ;;  %v719_v59 = vadd.f32 %v711_v58, %v579_v20 }
 0x11c   : > { %v721_v16 = vadd.f32 %v713_v36, %v581_v40  ;;  %v851_v17 = vmul.f32 %v2053_v53, %v2056_v26  ;;  %v929_v27 = vmul.f32 %v2055_v21, %v1836_v29  ;;  %v724_v54 = vadd.f32 %v716_v1, %v584_v41 }
 0x11d   : > { %v725_v23 = vadd.f32 %v717_v49, %v585_v55  ;;  %v926_v8 = vmul.f32 %v2055_v21, %v1830_v32  ;;  %v860_v0 = vadd.f32 %v852_v62, %v720_v19  ;;  %v722_v38 = vadd.f32 %v714_v22, %v582_v6 }
 0x11e   : > { %v1199_v30 = vpop.eup %1198  ;;  %v723_v50 = vadd.f32 %v715_v44, %v583_v57  ;;  %v927_v39 = vmul.f32 %v2055_v21, %v1832_v28  ;;  %v861_v40 = vadd.f32 %v853_v10, %v721_v16  ;;  %v858_v25 = vadd.f32 %v850_v52, %v718_v12 }
 0x11f   : > { %v1201_v24 = vpop.eup %1200  ;;  %v936_v33 = vsub.f32 %v860_v0, %v928_v5  ;;  %v856_v7 = vmul.f32 %v2053_v53, %v1855_v45  ;;  %v854_v29 = vmul.f32 %v2053_v53, %v1870_v2  ;;  %v859_v3 = vadd.f32 %v851_v17, %v719_v59 }
 0x120   : > { %v1203_v20 = vpop.eup %1202  ;;  %v937_v32 = vsub.f32 %v861_v40, %v929_v27  ;;  %v857_v34 = vmul.f32 %v2053_v53, %v2057_v15  ;;  %v855_v28 = vmul.f32 %v2053_v53, %v1878_v4  ;;  %v934_v18 = vsub.f32 %v858_v25, %v926_v8 }
 0x121   : > { %v1205_v61 = vpop.eup %1204  ;;  %v944_v31 = vmul.f32 %v1199_v30, %v936_v33  ;;  %v932_v42 = vmul.f32 %v2055_v21, %v1872_v48  ;;  %v930_v45 = vmul.f32 %v2055_v21, %v1896_v51  ;;  %v935_v2 = vsub.f32 %v859_v3, %v927_v39 }
 0x122   : > { %v945_v46 = vmul.f32 %v1201_v24, %v937_v32  ;;  %v933_v6 = vmul.f32 %v2055_v21, %v1874_v37  ;;  %v931_v35 = vmul.f32 %v2055_v21, %v1898_v47  ;;  %v942_v63 = vmul.f32 %v1203_v20, %v934_v18 }
 0x123   : > { %v864_v57 = vadd.f32 %v856_v7, %v724_v54  ;;  %v862_v4 = vadd.f32 %v854_v29, %v722_v38  ;;  %v950_v12 = vstv %s1945_s12  ;;  %v943_v43 = vmul.f32 %v1205_v61, %v935_v2 }
 0x124   : > { %v1207_v58 = vpop.eup %1206  ;;  %v865_v9 = vadd.f32 %v857_v34, %v725_v23  ;;  %v863_v48 = vadd.f32 %v855_v28, %v723_v50  ;;  %v953_v60 = vadd.f32 %v950_v12, %v944_v31  ;;  %v954_v36 = vadd.f32 %v950_v12, %v945_v46 }
 0x125   : > { %v1209_v51 = vpop.eup %1208  ;;  %v940_v56 = vsub.f32 %v864_v57, %v932_v42  ;;  %v938_v13 = vsub.f32 %v862_v4, %v930_v45  ;;  %v951_v1 = vadd.f32 %v950_v12, %v942_v63  ;;  %v952_v62 = vadd.f32 %v950_v12, %v943_v43 }
 0x126   : > { %v1211_v37 = vpop.eup %1210  ;;  %v941_v19 = vsub.f32 %v865_v9, %v933_v6  ;;  %v939_v47 = vsub.f32 %v863_v48, %v931_v35  ;;  %v965_v16 = vstv %s1972_s13 }
 0x127   : > { %v1213_v14 = vpop.eup %1212  ;;  %v946_v49 = vmul.f32 %v1211_v37, %v938_v13  ;;  %v948_v53 = vmul.f32 %v1207_v58, %v940_v56  ;;  %v959_v41 = vadd.f32 %v953_v60, %v951_v1  ;;  %v960_v11 = vadd.f32 %v954_v36, %v952_v62 }
 0x128   : > { %v947_v22 = vmul.f32 %v1213_v14, %v939_v47  ;;  %v949_v44 = vmul.f32 %v1209_v51, %v941_v19 }
 0x129   : > { %v955_v10 = vadd.f32 %v950_v12, %v946_v49  ;;  %v957_v52 = vadd.f32 %v950_v12, %v948_v53 }
 0x12a   : > { %v956_v55 = vadd.f32 %v950_v12, %v947_v22  ;;  %v958_v5 = vadd.f32 %v950_v12, %v949_v44 }
 0x12b   : > { %v961_v21 = vadd.f32 %v959_v41, %v955_v10 }
 0x12c   : > { %v962_v59 = vadd.f32 %v960_v11, %v956_v55 }
 0x12d   : > { %v963_v26 = vadd.f32 %v961_v21, %v957_v52 }
 0x12e   : > { %v964_v17 = vadd.f32 %v962_v59, %v958_v5 }
 0x12f   : > { %v966_v27 = vsub.f32 %v963_v26, %v965_v16 }
 0x130   : > { %v967_v54 = vsub.f32 %v964_v17, %v965_v16 }
 0x131   : > { %v968_v23 = vmax.f32 %v966_v27, 0.0 }
 0x132   : > { %v969_v8 = vmax.f32 %v967_v54, 0.0 }
 0x133   : > { %970 = vst [vmem:[%s229_s24] sm:$0xff] %v968_v23 }
 0x134   : > { %971 = vst [vmem:[%s229_s24 + $0x8] sm:$0xff] %v969_v8 }
 0x135   : > { %1242 = shalt.err (!%p1239_p3)
}
 0x136   : > { %s1243_s10 = scalar_lea.hbm %s1982_s5, 256  ;;  %s1247_s13 = scalar_lea.hbm %s2028_s4, 512 }
 0x137   : > { %p1244_p5 = scmp.ne.s32.totalorder %s1982_s5, %s1243_s10  ;;  %p1248_p9 = scmp.lt.s32.totalorder %s1982_s5, %s2028_s4 }
 0x138   : > { %p1249_p10 = scmp.lt.s32.totalorder %s1247_s13, %s1243_s10 }
 0x139   : > { %p1245_p6 = pnand %p1244_p5, %p1382_p4 }
 0x13a   : > { %p1250_p11 = por %p1249_p10, %p1248_p9 }
 0x13b   : > { %p1246_p7 = pneg %p1245_p6 }
 0x13d   : > { %p1251_p12 = pnand %p1250_p11, %p1246_p7 }
 0x13f   : > { %1254 = shalt.err (!%p1251_p12)
}
 0x140   : > { %1112 = dma.vmem_to_hbm [thread:$0]  (%p1382_p4), %s990_s26, 256, %s1982_s5, %s973_s6  }
 0x141 PF: > { %p1124_p13 = scmp.ge.s32.totalorder %s1309_s20, 2  ;;  %s1001_s22 = sand.u32 1, %s1289_s15  }
 0x142   : > { %s1002_s24 = scalar_lea.sflag [#allocation3], %s1001_s22 }
 0x143   : > { %p1119_p0 = pnand %p1124_p13, %p1389_p8 }
 0x145   : > { %p1120_p1 = pneg %p1119_p0 }
 0x147   : > { %1284 = dma.done.wait (%p1120_p1), %s1002_s24, 256  }
 0x148   : > { %1286 = vsyncadd (%p1120_p1), %s1002_s24, 4294967040  ;;  %s18_s20 = sadd.s32 1, %s1309_s20   ;;  %s2058_s15 = smov %s1293_s16 }
 0x149   : > { %p15_p2 = scmp.ge.s32.totalorder %s18_s20, 4   ;;  %s2059_s16 = smov %s1297_s17 }
 0x14a   : > { %s2060_s17 = smov %s1395_s28  ;;  %s2061_s18 = smov %s1305_s19 }
 0x14b   : > { %s2062_s19 = smov %s2064_s23  ;;  %17 = sbr.rel (!%p15_p2) target bundleno = 5 (0x5), region = 76 }
 0x150   :  { %1007 = vsyncpa [#allocation3], 1 }
 0x151   :  { %1009 = vsyncpa [#allocation3 + $0x1], 1 }
 0x152   :  { %1010 = vsyncpa [#allocation4], 1 }
 0x153   :  { %1012 = vsyncpa [#allocation4 + $0x1], 1 }

</bundles_post_ra>
